<compile_context>
chip_gen: v6e
topology: v6e:2x2x1
jax: 0.10.0
libtpu: 0.0.40
codegen_flags: <defaults>
</compile_context>

<pallas_src>
import math
from functools import partial

import jax
import jax.numpy as jnp
from jax.experimental import pallas as pl
from jax.experimental.pallas import tpu as pltpu

# Small, module-consistent sizes: seq=8, batch=2, d_model=32, n_head=4.
D_MODEL = 32
N_HEAD = 4
HEAD_DIM = D_MODEL // N_HEAD
SEQ = 8
BATCH = 2
EPS = 1e-5  # nn.LayerNorm default


def _layernorm(x, w, b):
    # LayerNorm computed in fp32 (matches the fp16-safe LayerNorm subclass).
    xf = x.astype(jnp.float32)
    mu = jnp.mean(xf, axis=-1, keepdims=True)
    var = jnp.mean((xf - mu) ** 2, axis=-1, keepdims=True)
    return (xf - mu) * jax.lax.rsqrt(var + EPS) * w + b


def _residual_block_kernel(x_ref, w_in_ref, w_out_ref, prm_ref, o_ref, *, n_head):
    """One grid step = one batch element; everything lives in VMEM.

    x_ref:    (L, E)          one batch's sequence (leading batch dim squeezed)
    w_in_ref: (E, 7E)         lanes [0, 4E) = W_fc, lanes [4E, 7E) = W_qkv
    w_out_ref:(5E, E)         rows  [0, E)  = W_o,  rows  [E, 5E)  = W_proj
    prm_ref:  (8, 4E)         row-indexed biases / LayerNorm params
    """
    L, E = x_ref.shape
    hd = E // n_head
    scale = 1.0 / math.sqrt(hd)

    x = x_ref[...].astype(jnp.float32)                        # (L, E)

    # Row-indexed params (sublane selects + prefix lane slices -> no rotates).
    ln1_w = prm_ref[0:1, 0:E]
    ln1_b = prm_ref[1:2, 0:E]
    b_o = prm_ref[2:3, 0:E]
    ln2_w = prm_ref[3:4, 0:E]
    ln2_b = prm_ref[4:5, 0:E]
    b_pr = prm_ref[5:6, 0:E]
    b_qkv = prm_ref[6:7, 0:3 * E]
    b_fc = prm_ref[7:8, :]                                     # (1, 4E)

    # Aligned weight views (lane offset 0 / 128, sublane offsets multiples of 8).
    w_fc = w_in_ref[:, 0:4 * E]                                # (E, 4E)
    w_qkv = w_in_ref[:, 4 * E:7 * E]                           # (E, 3E)
    w_o = w_out_ref[0:E, :]                                    # (E, E)
    w_pr = w_out_ref[E:5 * E, :]                               # (4E, E)

    # ---- attention branch: x + MHA(LN1(x)) ----
    y = _layernorm(x, ln1_w, ln1_b)
    qkv = jnp.dot(y, w_qkv, preferred_element_type=jnp.float32) + b_qkv  # (L, 3E)
    q = qkv[:, 0:E] * scale          # scale applied post-bias, as in PyTorch
    k = qkv[:, E:2 * E]
    v = qkv[:, 2 * E:3 * E]

    # TODO(synk): attn_mask is None in this instantiation; a user-supplied
    # additive mask would be added to `s` below before the softmax.
    nt_dims = (((1,), (1,)), ((), ()))   # contract head_dim on head_dim (NT form)
    heads = []
    for h in range(n_head):              # static unroll over heads
        sl = slice(h * hd, (h + 1) * hd)
        s = jax.lax.dot_general(q[:, sl], k[:, sl], nt_dims,
                                preferred_element_type=jnp.float32)      # (L, L)
        s = s - jnp.max(s, axis=-1, keepdims=True)
        p = jnp.exp(s)
        p = p / jnp.sum(p, axis=-1, keepdims=True)            # exact softmax
        heads.append(jnp.dot(p, v[:, sl], preferred_element_type=jnp.float32))
    ctx = jnp.concatenate(heads, axis=-1)                      # (L, E) in one vreg
    attn = jnp.dot(ctx, w_o, preferred_element_type=jnp.float32) + b_o
    x1 = x + attn

    # ---- MLP branch: x1 + c_proj(QuickGELU(c_fc(LN2(x1)))) ----
    y2 = _layernorm(x1, ln2_w, ln2_b)
    hmid = jnp.dot(y2, w_fc, preferred_element_type=jnp.float32) + b_fc  # (L, 4E)
    hmid = hmid * jax.nn.sigmoid(1.702 * hmid)                 # QuickGELU
    mlp = jnp.dot(hmid, w_pr, preferred_element_type=jnp.float32) + b_pr

    o_ref[...] = (x1 + mlp).astype(o_ref.dtype)


def residual_attention_block(x_lbe, packed):
    """x_lbe: (seq, batch, d_model) — PyTorch nn.MultiheadAttention layout."""
    L, B, E = x_lbe.shape
    x_ble = jnp.transpose(x_lbe, (1, 0, 2))                    # (B, L, E)

    w_in, w_out, prm = packed["w_in"], packed["w_out"], packed["prm"]
    out = pl.pallas_call(
        partial(_residual_block_kernel, n_head=N_HEAD),
        out_shape=jax.ShapeDtypeStruct((B, L, E), x_lbe.dtype),
        grid=(B,),
        in_specs=[
            pl.BlockSpec((None, L, E), lambda b: (b, 0, 0)),   # per-batch slab
            pl.BlockSpec(w_in.shape, lambda b: (0, 0)),        # weights resident
            pl.BlockSpec(w_out.shape, lambda b: (0, 0)),
            pl.BlockSpec(prm.shape, lambda b: (0, 0)),
        ],
        out_specs=pl.BlockSpec((None, L, E), lambda b: (b, 0, 0)),
        compiler_params=pltpu.CompilerParams(
            dimension_semantics=("parallel",)),                # v7x: 2nd TC usable
    )(x_ble, w_in, w_out, prm)
    return jnp.transpose(out, (1, 0, 2))


def make_raw_params(key, d_model=D_MODEL):
    """Deterministic synthetic parameters in PyTorch layout/shapes."""
    E = d_model
    ks = jax.random.split(key, 12)
    s = 0.05
    return {
        "ln1_w": 1.0 + 0.1 * jax.random.normal(ks[0], (E,), jnp.float32),
        "ln1_b": 0.05 * jax.random.normal(ks[1], (E,), jnp.float32),
        "in_proj_w": s * jax.random.normal(ks[2], (3 * E, E), jnp.float32),
        "in_proj_b": s * jax.random.normal(ks[3], (3 * E,), jnp.float32),
        "out_proj_w": s * jax.random.normal(ks[4], (E, E), jnp.float32),
        "out_proj_b": s * jax.random.normal(ks[5], (E,), jnp.float32),
        "ln2_w": 1.0 + 0.1 * jax.random.normal(ks[6], (E,), jnp.float32),
        "ln2_b": 0.05 * jax.random.normal(ks[7], (E,), jnp.float32),
        "fc_w": s * jax.random.normal(ks[8], (4 * E, E), jnp.float32),
        "fc_b": s * jax.random.normal(ks[9], (4 * E,), jnp.float32),
        "pr_w": s * jax.random.normal(ks[10], (E, 4 * E), jnp.float32),
        "pr_b": s * jax.random.normal(ks[11], (E,), jnp.float32),
    }


def pack_params(raw, d_model=D_MODEL):
    """Pack into 3 kernel operands with aligned, row-indexed access.

    w_in  (E, 7E): lanes [0,4E) = W_fc (128-aligned), lanes [4E,7E) = W_qkv.
    w_out (5E, E): rows [0,E) = W_o, rows [E,5E) = W_proj (8-sublane aligned).
    prm   (8, 4E): one parameter per row (prefix lanes used), no padding rows.
    """
    E = d_model
    wq = raw["in_proj_w"][:E].T
    wk = raw["in_proj_w"][E:2 * E].T
    wv = raw["in_proj_w"][2 * E:].T
    w_fc = raw["fc_w"].T                                       # (E, 4E)
    w_in = jnp.concatenate([w_fc, wq, wk, wv], axis=1)         # (E, 7E) = (32, 224)
    w_out = jnp.concatenate([raw["out_proj_w"].T, raw["pr_w"].T], axis=0)  # (5E, E)

    def row(v):
        r = jnp.zeros((4 * E,), jnp.float32)
        return r.at[: v.shape[0]].set(v)

    prm = jnp.stack([
        row(raw["ln1_w"]),          # 0
        row(raw["ln1_b"]),          # 1
        row(raw["out_proj_b"]),     # 2
        row(raw["ln2_w"]),          # 3
        row(raw["ln2_b"]),          # 4
        row(raw["pr_b"]),           # 5
        row(raw["in_proj_b"]),      # 6  (b_q | b_k | b_v in lanes [0, 3E))
        row(raw["fc_b"]),           # 7  (lanes [0, 4E))
    ])                               # (8, 4E) = (8, 128)
    return {"w_in": w_in, "w_out": w_out, "prm": prm}


def reference_jax(x_lbe, raw):
    """Pure-JAX reference mirroring the PyTorch forward, for verification."""
    L, B, E = x_lbe.shape
    H, hd = N_HEAD, HEAD_DIM
    x = jnp.transpose(x_lbe, (1, 0, 2))   # (B, L, E)

    def ln(v, w, b):
        mu = v.mean(-1, keepdims=True)
        var = ((v - mu) ** 2).mean(-1, keepdims=True)
        return (v - mu) / jnp.sqrt(var + EPS) * w + b

    y = ln(x, raw["ln1_w"], raw["ln1_b"])
    q = y @ raw["in_proj_w"][:E].T + raw["in_proj_b"][:E]
    k = y @ raw["in_proj_w"][E:2 * E].T + raw["in_proj_b"][E:2 * E]
    v = y @ raw["in_proj_w"][2 * E:].T + raw["in_proj_b"][2 * E:]

    def split(t):  # (B, L, E) -> (B, H, L, hd)
        return t.reshape(B, L, H, hd).transpose(0, 2, 1, 3)

    qh, kh, vh = split(q), split(k), split(v)
    s = jnp.einsum("bhld,bhmd->bhlm", qh, kh) / math.sqrt(hd)
    p = jax.nn.softmax(s, axis=-1)
    o = jnp.einsum("bhlm,bhmd->bhld", p, vh)
    o = o.transpose(0, 2, 1, 3).reshape(B, L, E)
    attn = o @ raw["out_proj_w"].T + raw["out_proj_b"]
    x1 = x + attn

    y2 = ln(x1, raw["ln2_w"], raw["ln2_b"])
    h = y2 @ raw["fc_w"].T + raw["fc_b"]
    h = h * jax.nn.sigmoid(1.702 * h)
    mlp = h @ raw["pr_w"].T + raw["pr_b"]
    return jnp.transpose(x1 + mlp, (1, 0, 2))


if __name__ == "__main__":
    key = jax.random.PRNGKey(0)
    kx, kp = jax.random.split(key)
    x = jax.random.normal(kx, (SEQ, BATCH, D_MODEL), jnp.float32)  # (L, N, E)
    raw = make_raw_params(kp)
    packed = pack_params(raw)

    out = residual_attention_block(x, packed)
    out = jax.block_until_ready(out)

    ref = reference_jax(x, raw)
    assert out.shape == (SEQ, BATCH, D_MODEL)
    assert jnp.allclose(out, ref, atol=1e-4, rtol=1e-4), (
        f"max abs err {float(jnp.max(jnp.abs(out - ref)))}")

    print("KERNEL_OK")
</pallas_src>

<mosaic_0001>
module attributes {stable_mosaic.version = 11 : i64} {
  func.func @_residual_block_kernel(%arg0: i32, %arg1: memref<1x8x32xf32, #tpu.memory_space<vmem>>, %arg2: memref<32x224xf32, #tpu.memory_space<vmem>>, %arg3: memref<160x32xf32, #tpu.memory_space<vmem>>, %arg4: memref<8x128xf32, #tpu.memory_space<vmem>>, %arg5: memref<1x8x32xf32, #tpu.memory_space<vmem>>) attributes {dimension_semantics = [#tpu.dimension_semantics<parallel>], iteration_bounds = array<i64: 2>, scalar_prefetch = 0 : i64, scratch_operands = 0 : i64, tpu.core_type = #tpu.core_type<tc>, window_params = [{transform_indices = @transform_0, window_bounds = array<i64: 1, 8, 32>}, {pipeline_mode = #tpu.pipeline_mode<synchronous>, transform_indices = @transform_1, window_bounds = array<i64: 32, 224>}, {pipeline_mode = #tpu.pipeline_mode<synchronous>, transform_indices = @transform_2, window_bounds = array<i64: 160, 32>}, {pipeline_mode = #tpu.pipeline_mode<synchronous>, transform_indices = @transform_3, window_bounds = array<i64: 8, 128>}, {transform_indices = @transform_4, window_bounds = array<i64: 1, 8, 32>}]} {
    %c0 = arith.constant 0 : index
    %c0_0 = arith.constant 0 : index
    %c0_1 = arith.constant 0 : index
    %0 = vector.load %arg1[%c0, %c0_0, %c0_1] : memref<1x8x32xf32, #tpu.memory_space<vmem>>, vector<1x8x32xf32>
    %1 = vector.shape_cast %0 : vector<1x8x32xf32> to vector<8x32xf32>
    %c0_2 = arith.constant 0 : index
    %c0_3 = arith.constant 0 : index
    %2 = vector.load %arg4[%c0_2, %c0_3] : memref<8x128xf32, #tpu.memory_space<vmem>>, vector<1x32xf32>
    %c1 = arith.constant 1 : index
    %c0_4 = arith.constant 0 : index
    %3 = vector.load %arg4[%c1, %c0_4] : memref<8x128xf32, #tpu.memory_space<vmem>>, vector<1x32xf32>
    %c2 = arith.constant 2 : index
    %c0_5 = arith.constant 0 : index
    %4 = vector.load %arg4[%c2, %c0_5] : memref<8x128xf32, #tpu.memory_space<vmem>>, vector<1x32xf32>
    %c3 = arith.constant 3 : index
    %c0_6 = arith.constant 0 : index
    %5 = vector.load %arg4[%c3, %c0_6] : memref<8x128xf32, #tpu.memory_space<vmem>>, vector<1x32xf32>
    %c4 = arith.constant 4 : index
    %c0_7 = arith.constant 0 : index
    %6 = vector.load %arg4[%c4, %c0_7] : memref<8x128xf32, #tpu.memory_space<vmem>>, vector<1x32xf32>
    %c5 = arith.constant 5 : index
    %c0_8 = arith.constant 0 : index
    %7 = vector.load %arg4[%c5, %c0_8] : memref<8x128xf32, #tpu.memory_space<vmem>>, vector<1x32xf32>
    %c6 = arith.constant 6 : index
    %c0_9 = arith.constant 0 : index
    %8 = vector.load %arg4[%c6, %c0_9] : memref<8x128xf32, #tpu.memory_space<vmem>>, vector<1x96xf32>
    %c7 = arith.constant 7 : index
    %c0_10 = arith.constant 0 : index
    %9 = vector.load %arg4[%c7, %c0_10] : memref<8x128xf32, #tpu.memory_space<vmem>>, vector<1x128xf32>
    %c0_11 = arith.constant 0 : index
    %c0_12 = arith.constant 0 : index
    %10 = vector.load %arg2[%c0_11, %c0_12] : memref<32x224xf32, #tpu.memory_space<vmem>>, vector<32x128xf32>
    %c0_13 = arith.constant 0 : index
    %c128 = arith.constant 128 : index
    %11 = vector.load %arg2[%c0_13, %c128] : memref<32x224xf32, #tpu.memory_space<vmem>>, vector<32x96xf32>
    %c0_14 = arith.constant 0 : index
    %c0_15 = arith.constant 0 : index
    %12 = vector.load %arg3[%c0_14, %c0_15] : memref<160x32xf32, #tpu.memory_space<vmem>>, vector<32x32xf32>
    %c32 = arith.constant 32 : index
    %c0_16 = arith.constant 0 : index
    %13 = vector.load %arg3[%c32, %c0_16] : memref<160x32xf32, #tpu.memory_space<vmem>>, vector<128x32xf32>
    %cst = arith.constant dense<0.000000e+00> : vector<8xf32>
    %14 = vector.multi_reduction <add>, %1, %cst [1] : vector<8x32xf32> to vector<8xf32>
    %15 = vector.shape_cast %14 : vector<8xf32> to vector<8x1xf32>
    %cst_17 = arith.constant 3.200000e+01 : f32
    %16 = vector.broadcast %cst_17 : f32 to vector<8x1xf32>
    %17 = arith.divf %15, %16 : vector<8x1xf32>
    %18 = vector.broadcast %17 : vector<8x1xf32> to vector<8x32xf32>
    %19 = arith.subf %1, %18 : vector<8x32xf32>
    %20 = arith.mulf %19, %19 : vector<8x32xf32>
    %cst_18 = arith.constant dense<0.000000e+00> : vector<8xf32>
    %21 = vector.multi_reduction <add>, %20, %cst_18 [1] : vector<8x32xf32> to vector<8xf32>
    %22 = vector.shape_cast %21 : vector<8xf32> to vector<8x1xf32>
    %cst_19 = arith.constant 3.200000e+01 : f32
    %23 = vector.broadcast %cst_19 : f32 to vector<8x1xf32>
    %24 = arith.divf %22, %23 : vector<8x1xf32>
    %25 = vector.broadcast %17 : vector<8x1xf32> to vector<8x32xf32>
    %26 = arith.subf %1, %25 : vector<8x32xf32>
    %cst_20 = arith.constant 9.99999974E-6 : f32
    %27 = vector.broadcast %cst_20 : f32 to vector<8x1xf32>
    %28 = arith.addf %24, %27 : vector<8x1xf32>
    %29 = math.rsqrt %28 : vector<8x1xf32>
    %30 = vector.broadcast %29 : vector<8x1xf32> to vector<8x32xf32>
    %31 = arith.mulf %26, %30 : vector<8x32xf32>
    %32 = vector.broadcast %2 : vector<1x32xf32> to vector<8x32xf32>
    %33 = arith.mulf %31, %32 : vector<8x32xf32>
    %34 = vector.broadcast %3 : vector<1x32xf32> to vector<8x32xf32>
    %35 = arith.addf %33, %34 : vector<8x32xf32>
    %cst_21 = arith.constant dense<0.000000e+00> : vector<8x96xf32>
    %36 = tpu.matmul %35, %11, %cst_21 {dimension_numbers = #tpu.dot_dimension_numbers<[1], [0], [0], [1], [0, 0, 1, 1], [], []>} : vector<8x32xf32>, vector<32x96xf32>, vector<8x96xf32> -> vector<8x96xf32>
    %37 = vector.broadcast %8 : vector<1x96xf32> to vector<8x96xf32>
    %38 = arith.addf %36, %37 : vector<8x96xf32>
    %39 = vector.extract_strided_slice %38 {offsets = [0, 0], sizes = [8, 32], strides = [1, 1]} : vector<8x96xf32> to vector<8x32xf32>
    %cst_22 = arith.constant 0.353553385 : f32
    %40 = vector.broadcast %cst_22 : f32 to vector<8x32xf32>
    %41 = arith.mulf %39, %40 : vector<8x32xf32>
    %42 = vector.extract_strided_slice %38 {offsets = [0, 32], sizes = [8, 32], strides = [1, 1]} : vector<8x96xf32> to vector<8x32xf32>
    %43 = vector.extract_strided_slice %38 {offsets = [0, 64], sizes = [8, 32], strides = [1, 1]} : vector<8x96xf32> to vector<8x32xf32>
    %44 = vector.extract_strided_slice %41 {offsets = [0, 0], sizes = [8, 8], strides = [1, 1]} : vector<8x32xf32> to vector<8x8xf32>
    %45 = vector.extract_strided_slice %42 {offsets = [0, 0], sizes = [8, 8], strides = [1, 1]} : vector<8x32xf32> to vector<8x8xf32>
    %cst_23 = arith.constant dense<0.000000e+00> : vector<8x8xf32>
    %46 = tpu.matmul %44, %45, %cst_23 {dimension_numbers = #tpu.dot_dimension_numbers<[1], [1], [0], [0], [0, 0, 1, 0], [], []>} : vector<8x8xf32>, vector<8x8xf32>, vector<8x8xf32> -> vector<8x8xf32>
    %cst_24 = arith.constant dense<0xFF800000> : vector<8xf32>
    %47 = vector.multi_reduction <maximumf>, %46, %cst_24 [1] : vector<8x8xf32> to vector<8xf32>
    %48 = vector.shape_cast %47 : vector<8xf32> to vector<8x1xf32>
    %49 = vector.broadcast %48 : vector<8x1xf32> to vector<8x8xf32>
    %50 = arith.subf %46, %49 : vector<8x8xf32>
    %51 = math.exp %50 : vector<8x8xf32>
    %cst_25 = arith.constant dense<0.000000e+00> : vector<8xf32>
    %52 = vector.multi_reduction <add>, %51, %cst_25 [1] : vector<8x8xf32> to vector<8xf32>
    %53 = vector.shape_cast %52 : vector<8xf32> to vector<8x1xf32>
    %54 = vector.broadcast %53 : vector<8x1xf32> to vector<8x8xf32>
    %55 = arith.divf %51, %54 : vector<8x8xf32>
    %56 = vector.extract_strided_slice %43 {offsets = [0, 0], sizes = [8, 8], strides = [1, 1]} : vector<8x32xf32> to vector<8x8xf32>
    %cst_26 = arith.constant dense<0.000000e+00> : vector<8x8xf32>
    %57 = tpu.matmul %55, %56, %cst_26 {dimension_numbers = #tpu.dot_dimension_numbers<[1], [0], [0], [1], [0, 0, 1, 1], [], []>} : vector<8x8xf32>, vector<8x8xf32>, vector<8x8xf32> -> vector<8x8xf32>
    %58 = vector.extract_strided_slice %41 {offsets = [0, 8], sizes = [8, 8], strides = [1, 1]} : vector<8x32xf32> to vector<8x8xf32>
    %59 = vector.extract_strided_slice %42 {offsets = [0, 8], sizes = [8, 8], strides = [1, 1]} : vector<8x32xf32> to vector<8x8xf32>
    %cst_27 = arith.constant dense<0.000000e+00> : vector<8x8xf32>
    %60 = tpu.matmul %58, %59, %cst_27 {dimension_numbers = #tpu.dot_dimension_numbers<[1], [1], [0], [0], [0, 0, 1, 0], [], []>} : vector<8x8xf32>, vector<8x8xf32>, vector<8x8xf32> -> vector<8x8xf32>
    %cst_28 = arith.constant dense<0xFF800000> : vector<8xf32>
    %61 = vector.multi_reduction <maximumf>, %60, %cst_28 [1] : vector<8x8xf32> to vector<8xf32>
    %62 = vector.shape_cast %61 : vector<8xf32> to vector<8x1xf32>
    %63 = vector.broadcast %62 : vector<8x1xf32> to vector<8x8xf32>
    %64 = arith.subf %60, %63 : vector<8x8xf32>
    %65 = math.exp %64 : vector<8x8xf32>
    %cst_29 = arith.constant dense<0.000000e+00> : vector<8xf32>
    %66 = vector.multi_reduction <add>, %65, %cst_29 [1] : vector<8x8xf32> to vector<8xf32>
    %67 = vector.shape_cast %66 : vector<8xf32> to vector<8x1xf32>
    %68 = vector.broadcast %67 : vector<8x1xf32> to vector<8x8xf32>
    %69 = arith.divf %65, %68 : vector<8x8xf32>
    %70 = vector.extract_strided_slice %43 {offsets = [0, 8], sizes = [8, 8], strides = [1, 1]} : vector<8x32xf32> to vector<8x8xf32>
    %cst_30 = arith.constant dense<0.000000e+00> : vector<8x8xf32>
    %71 = tpu.matmul %69, %70, %cst_30 {dimension_numbers = #tpu.dot_dimension_numbers<[1], [0], [0], [1], [0, 0, 1, 1], [], []>} : vector<8x8xf32>, vector<8x8xf32>, vector<8x8xf32> -> vector<8x8xf32>
    %72 = vector.extract_strided_slice %41 {offsets = [0, 16], sizes = [8, 8], strides = [1, 1]} : vector<8x32xf32> to vector<8x8xf32>
    %73 = vector.extract_strided_slice %42 {offsets = [0, 16], sizes = [8, 8], strides = [1, 1]} : vector<8x32xf32> to vector<8x8xf32>
    %cst_31 = arith.constant dense<0.000000e+00> : vector<8x8xf32>
    %74 = tpu.matmul %72, %73, %cst_31 {dimension_numbers = #tpu.dot_dimension_numbers<[1], [1], [0], [0], [0, 0, 1, 0], [], []>} : vector<8x8xf32>, vector<8x8xf32>, vector<8x8xf32> -> vector<8x8xf32>
    %cst_32 = arith.constant dense<0xFF800000> : vector<8xf32>
    %75 = vector.multi_reduction <maximumf>, %74, %cst_32 [1] : vector<8x8xf32> to vector<8xf32>
    %76 = vector.shape_cast %75 : vector<8xf32> to vector<8x1xf32>
    %77 = vector.broadcast %76 : vector<8x1xf32> to vector<8x8xf32>
    %78 = arith.subf %74, %77 : vector<8x8xf32>
    %79 = math.exp %78 : vector<8x8xf32>
    %cst_33 = arith.constant dense<0.000000e+00> : vector<8xf32>
    %80 = vector.multi_reduction <add>, %79, %cst_33 [1] : vector<8x8xf32> to vector<8xf32>
    %81 = vector.shape_cast %80 : vector<8xf32> to vector<8x1xf32>
    %82 = vector.broadcast %81 : vector<8x1xf32> to vector<8x8xf32>
    %83 = arith.divf %79, %82 : vector<8x8xf32>
    %84 = vector.extract_strided_slice %43 {offsets = [0, 16], sizes = [8, 8], strides = [1, 1]} : vector<8x32xf32> to vector<8x8xf32>
    %cst_34 = arith.constant dense<0.000000e+00> : vector<8x8xf32>
    %85 = tpu.matmul %83, %84, %cst_34 {dimension_numbers = #tpu.dot_dimension_numbers<[1], [0], [0], [1], [0, 0, 1, 1], [], []>} : vector<8x8xf32>, vector<8x8xf32>, vector<8x8xf32> -> vector<8x8xf32>
    %86 = vector.extract_strided_slice %41 {offsets = [0, 24], sizes = [8, 8], strides = [1, 1]} : vector<8x32xf32> to vector<8x8xf32>
    %87 = vector.extract_strided_slice %42 {offsets = [0, 24], sizes = [8, 8], strides = [1, 1]} : vector<8x32xf32> to vector<8x8xf32>
    %cst_35 = arith.constant dense<0.000000e+00> : vector<8x8xf32>
    %88 = tpu.matmul %86, %87, %cst_35 {dimension_numbers = #tpu.dot_dimension_numbers<[1], [1], [0], [0], [0, 0, 1, 0], [], []>} : vector<8x8xf32>, vector<8x8xf32>, vector<8x8xf32> -> vector<8x8xf32>
    %cst_36 = arith.constant dense<0xFF800000> : vector<8xf32>
    %89 = vector.multi_reduction <maximumf>, %88, %cst_36 [1] : vector<8x8xf32> to vector<8xf32>
    %90 = vector.shape_cast %89 : vector<8xf32> to vector<8x1xf32>
    %91 = vector.broadcast %90 : vector<8x1xf32> to vector<8x8xf32>
    %92 = arith.subf %88, %91 : vector<8x8xf32>
    %93 = math.exp %92 : vector<8x8xf32>
    %cst_37 = arith.constant dense<0.000000e+00> : vector<8xf32>
    %94 = vector.multi_reduction <add>, %93, %cst_37 [1] : vector<8x8xf32> to vector<8xf32>
    %95 = vector.shape_cast %94 : vector<8xf32> to vector<8x1xf32>
    %96 = vector.broadcast %95 : vector<8x1xf32> to vector<8x8xf32>
    %97 = arith.divf %93, %96 : vector<8x8xf32>
    %98 = vector.extract_strided_slice %43 {offsets = [0, 24], sizes = [8, 8], strides = [1, 1]} : vector<8x32xf32> to vector<8x8xf32>
    %cst_38 = arith.constant dense<0.000000e+00> : vector<8x8xf32>
    %99 = tpu.matmul %97, %98, %cst_38 {dimension_numbers = #tpu.dot_dimension_numbers<[1], [0], [0], [1], [0, 0, 1, 1], [], []>} : vector<8x8xf32>, vector<8x8xf32>, vector<8x8xf32> -> vector<8x8xf32>
    %100 = tpu.concatenate %57, %71, %85, %99 in 1 : vector<8x8xf32>, vector<8x8xf32>, vector<8x8xf32>, vector<8x8xf32> -> vector<8x32xf32>
    %cst_39 = arith.constant dense<0.000000e+00> : vector<8x32xf32>
    %101 = tpu.matmul %100, %12, %cst_39 {dimension_numbers = #tpu.dot_dimension_numbers<[1], [0], [0], [1], [0, 0, 1, 1], [], []>} : vector<8x32xf32>, vector<32x32xf32>, vector<8x32xf32> -> vector<8x32xf32>
    %102 = vector.broadcast %4 : vector<1x32xf32> to vector<8x32xf32>
    %103 = arith.addf %101, %102 : vector<8x32xf32>
    %104 = arith.addf %1, %103 : vector<8x32xf32>
    %cst_40 = arith.constant dense<0.000000e+00> : vector<8xf32>
    %105 = vector.multi_reduction <add>, %104, %cst_40 [1] : vector<8x32xf32> to vector<8xf32>
    %106 = vector.shape_cast %105 : vector<8xf32> to vector<8x1xf32>
    %cst_41 = arith.constant 3.200000e+01 : f32
    %107 = vector.broadcast %cst_41 : f32 to vector<8x1xf32>
    %108 = arith.divf %106, %107 : vector<8x1xf32>
    %109 = vector.broadcast %108 : vector<8x1xf32> to vector<8x32xf32>
    %110 = arith.subf %104, %109 : vector<8x32xf32>
    %111 = arith.mulf %110, %110 : vector<8x32xf32>
    %cst_42 = arith.constant dense<0.000000e+00> : vector<8xf32>
    %112 = vector.multi_reduction <add>, %111, %cst_42 [1] : vector<8x32xf32> to vector<8xf32>
    %113 = vector.shape_cast %112 : vector<8xf32> to vector<8x1xf32>
    %cst_43 = arith.constant 3.200000e+01 : f32
    %114 = vector.broadcast %cst_43 : f32 to vector<8x1xf32>
    %115 = arith.divf %113, %114 : vector<8x1xf32>
    %116 = vector.broadcast %108 : vector<8x1xf32> to vector<8x32xf32>
    %117 = arith.subf %104, %116 : vector<8x32xf32>
    %cst_44 = arith.constant 9.99999974E-6 : f32
    %118 = vector.broadcast %cst_44 : f32 to vector<8x1xf32>
    %119 = arith.addf %115, %118 : vector<8x1xf32>
    %120 = math.rsqrt %119 : vector<8x1xf32>
    %121 = vector.broadcast %120 : vector<8x1xf32> to vector<8x32xf32>
    %122 = arith.mulf %117, %121 : vector<8x32xf32>
    %123 = vector.broadcast %5 : vector<1x32xf32> to vector<8x32xf32>
    %124 = arith.mulf %122, %123 : vector<8x32xf32>
    %125 = vector.broadcast %6 : vector<1x32xf32> to vector<8x32xf32>
    %126 = arith.addf %124, %125 : vector<8x32xf32>
    %cst_45 = arith.constant dense<0.000000e+00> : vector<8x128xf32>
    %127 = tpu.matmul %126, %10, %cst_45 {dimension_numbers = #tpu.dot_dimension_numbers<[1], [0], [0], [1], [0, 0, 1, 1], [], []>} : vector<8x32xf32>, vector<32x128xf32>, vector<8x128xf32> -> vector<8x128xf32>
    %128 = vector.broadcast %9 : vector<1x128xf32> to vector<8x128xf32>
    %129 = arith.addf %127, %128 : vector<8x128xf32>
    %cst_46 = arith.constant 1.702000e+00 : f32
    %130 = vector.broadcast %cst_46 : f32 to vector<8x128xf32>
    %131 = arith.mulf %130, %129 : vector<8x128xf32>
    %132 = arith.negf %131 : vector<8x128xf32>
    %133 = math.exp %132 : vector<8x128xf32>
    %cst_47 = arith.constant 1.000000e+00 : f32
    %134 = vector.broadcast %cst_47 : f32 to vector<8x128xf32>
    %135 = arith.addf %134, %133 : vector<8x128xf32>
    %136 = arith.divf %134, %135 : vector<8x128xf32>
    %137 = arith.mulf %129, %136 : vector<8x128xf32>
    %cst_48 = arith.constant dense<0.000000e+00> : vector<8x32xf32>
    %138 = tpu.matmul %137, %13, %cst_48 {dimension_numbers = #tpu.dot_dimension_numbers<[1], [0], [0], [1], [0, 0, 1, 1], [], []>} : vector<8x128xf32>, vector<128x32xf32>, vector<8x32xf32> -> vector<8x32xf32>
    %139 = vector.broadcast %7 : vector<1x32xf32> to vector<8x32xf32>
    %140 = arith.addf %138, %139 : vector<8x32xf32>
    %141 = arith.addf %104, %140 : vector<8x32xf32>
    %c0_49 = arith.constant 0 : index
    %c0_50 = arith.constant 0 : index
    %c0_51 = arith.constant 0 : index
    %142 = vector.load %arg5[%c0_49, %c0_50, %c0_51] : memref<1x8x32xf32, #tpu.memory_space<vmem>>, vector<1x8x32xf32>
    %143 = vector.shape_cast %142 : vector<1x8x32xf32> to vector<8x32xf32>
    %144 = vector.shape_cast %141 : vector<8x32xf32> to vector<1x8x32xf32>
    tpu.vector_store %arg5[%c0_49, %c0_50, %c0_51], %144 {strides = array<i32>} : memref<1x8x32xf32, #tpu.memory_space<vmem>>, vector<1x8x32xf32>,
    return
  }
  func.func @transform_0(%arg0: i32) -> (i32, i32, i32) {
    %c0_i32 = arith.constant 0 : i32
    %c0_i32_0 = arith.constant 0 : i32
    %c0_i32_1 = arith.constant 0 : i32
    return %arg0, %c0_i32, %c0_i32_0 : i32, i32, i32
  }
  func.func @transform_1(%arg0: i32) -> (i32, i32) {
    %c0_i32 = arith.constant 0 : i32
    %c0_i32_0 = arith.constant 0 : i32
    %c0_i32_1 = arith.constant 0 : i32
    return %c0_i32, %c0_i32_0 : i32, i32
  }
  func.func @transform_2(%arg0: i32) -> (i32, i32) {
    %c0_i32 = arith.constant 0 : i32
    %c0_i32_0 = arith.constant 0 : i32
    %c0_i32_1 = arith.constant 0 : i32
    return %c0_i32, %c0_i32_0 : i32, i32
  }
  func.func @transform_3(%arg0: i32) -> (i32, i32) {
    %c0_i32 = arith.constant 0 : i32
    %c0_i32_0 = arith.constant 0 : i32
    %c0_i32_1 = arith.constant 0 : i32
    return %c0_i32, %c0_i32_0 : i32, i32
  }
  func.func @transform_4(%arg0: i32) -> (i32, i32, i32) {
    %c0_i32 = arith.constant 0 : i32
    %c0_i32_0 = arith.constant 0 : i32
    %c0_i32_1 = arith.constant 0 : i32
    return %arg0, %c0_i32, %c0_i32_0 : i32, i32, i32
  }
}

</mosaic_0001>

<bundles_post_ra>
// kernel: tpu_custom_call.1
= control target key start
LH: loop header
LB: loop body
LE: loop exit
PB: predicated region body
PF: predicated region fallthrough
CT: control target
= control target key end

     0   :  { %9 = vsyncpa [#allocation3], 0  ;;  %s2024_s0 = inlined_call_operand.vmem [shape: f32[2,8,32], index: 0, kind: input, shape index: {}]   ;;  %s2025_s1 = inlined_call_operand.vmem [shape: f32[32,224], index: 1, kind: input, shape index: {}]   ;;  %s2026_s2 = inlined_call_operand.vmem [shape: f32[160,32], index: 2, kind: input, shape index: {}]   ;;  %s2027_s3 = inlined_call_operand.vmem [shape: f32[8,128], index: 3, kind: input, shape index: {}]   ;;  %s2028_s4 = inlined_call_operand.hbm [shape: f32[2,8,32], index: 4, kind: output, shape index: {}]  }
   0x1   :  { %11 = vsyncpa [#allocation3 + $0x1], 0  ;;  %s1719_s15 = smov 0   ;;  %s1721_s16 = smov 0  }
   0x2   :  { %s1723_s17 = smov 0   ;;  %s1725_s18 = smov 0  }
   0x3 LB: > { %s1740_s19 = sadd.s32 4294967295, %s1675_s18   ;;  %s1346_s20 = sadd.s32 4294967294, %s1675_s18   ;;  %s1675_s18 = sphi %s1725_s18, %s2034_s18   ;;  %s1671_s17 = sphi %s1723_s17, %s2033_s17   ;;  %s1667_s16 = sphi %s1721_s16, %s2032_s16   ;;  %s1663_s15 = sphi %s1719_s15, %s2031_s15  }
   0x4   : > { %s1744_s21 = sadd.s32 1, %s1675_s18   ;;  %s113_s22 = sadd.s32 1, %s1671_s17 }
   0x5   : > { %s110_s23 = ssub.s32 %s1675_s18, %s1744_s21  ;;  %p123_p0 = scmp.ne.s32.totalorder %s1671_s17, %s1667_s16 }
   0x6   : > { %p111_p1 = scmp.eq.s32.totalorder %s110_s23, 0  ;;  %p124_p2 = scmp.eq.s32.totalorder %s1740_s19, 1 }
   0x7   : > { %p129_p3 = scmp.ne.s32.totalorder %s1667_s16, %s1663_s15  ;;  %p130_p4 = scmp.eq.s32.totalorder %s1346_s20, 1 }
   0x8   : > { %s1755_s24 = scalar_select %p111_p1, %s1671_s17, %s113_s22  }
   0x9   : > { %p1757_p5 = por %p124_p2, %p123_p0  ;;  %p1761_p6 = por %p130_p4, %p129_p3 }
   0xa   : > { %p1349_p7 = scmp.ge.s32.totalorder %s1675_s18, 1  ;;  %p164_p8 = scmp.lt.s32.totalorder %s1675_s18, 3 }
   0xc   : > { %p165_p9 = pnand %p1349_p7, %p164_p8 }
   0xd   : > { %p189_p10 = scmp.lt.s32.totalorder (!%p165_p9), %s1740_s19, 1  ;;  %s1679_s29 = smov (!%p165_p9), 96  }
   0xe   : > { %168 = sbr.rel (%p165_p9) target bundleno = 2422 (0x976), region = 36  ;;  %s1680_s30 = smov (!%p165_p9), 120  }
   0xf   : > { %s1682_s6 = smov (!%p165_p9), 80   ;;  %s1683_s7 = smov (!%p165_p9), 72  }
  0x10   : > { %s1684_s8 = smov (!%p165_p9), 112   ;;  %s1685_s9 = smov (!%p165_p9), 104  }
  0x11   : > { %s1686_s10 = smov (!%p165_p9), 64   ;;  %s1687_s11 = smov (!%p165_p9), 48  }
  0x12   : > { %s1688_s12 = smov (!%p165_p9), 40   ;;  %s1689_s13 = smov (!%p165_p9), 56  }
  0x13   : > { %s190_s27 = scalar_select %p189_p10, %s1740_s19, 1  ;;  %vm230_vm0 = vcmask 261120   ;;  %v209_v7 = vld [vmem:[%s2025_s1 + $0x38] sm:$0xff]  ;;  %v1677_v8 = vmov 0.0   ;;  %v208_v9 = vld [vmem:[%s2025_s1 + $0x28] sm:$0xff]  ;;  %vm1678_vm1 = vmmov 0  }
  0x14   : > { %1428 = vmatprep.subr.mxu1 %v1677_v8  ;;  %1436 = vmatprep.mubr.msk.f32.mxu1 %vm1678_vm1, %v1677_v8  ;;  %v207_v10 = vld [vmem:[%s2025_s1 + $0x18] sm:$0xff]  ;;  %v206_v11 = vld [vmem:[%s2025_s1 + $0x8] sm:$0xff]  ;;  %v1352_v16 = vld [vmem:[%s2027_s3] ss:$0 sm:$0xff]  ;;  %vm336_vm2 = vcmask 64512   ;;  %vm1007_vm3 = vcmask 130048  }
  0x15   : > { %s1351_s28 = sshll.u32 %s190_s27, 3  ;;  %1429 = vmatpush3.msra.mxu1 %v209_v7  ;;  %1449 = vmatprep.subr.mxu0 %v1677_v8  ;;  %v1353_v18 = vld [vmem:[%s2027_s3 + $0x1] ss:$0 sm:$0xff]  ;;  %v1354_v21 = vld [vmem:[%s2027_s3 + $0x6] ss:$0 sm:$0xff]  ;;  %vm1009_vm4 = vcmask 195584  }
  0x16   : > { %s192_s5 = scalar_lea.vmem %s2024_s0, %s1351_s28  ;;  %1430 = vmatprep.subr.mxu1 %v1677_v8  ;;  %1451 = vmatprep.mubr.msk.f32.mxu0 %vm1678_vm1, %v1677_v8 }
  0x17   : > { %v1772_v0 = vld [vmem:[%s192_s5] sm:$0xff]  ;;  %1431 = vmatpush3.msra.mxu1 %v208_v9  ;;  %s1681_s5 = smov 88  }
  0x18   : > { %v231_v1 = vsel %vm230_vm0, %v1772_v0, 0.0  ;;  %1432 = vmatprep.subr.mxu1 %v1677_v8 }
  0x19   : > { %232 = vadd.xlane.f32.xlu0 %v231_v1  ;;  %1433 = vmatpush3.msra.mxu1 %v207_v10 }
  0x1a   : > { %1434 = vmatprep.subr.mxu1 %v1677_v8 }
  0x1b   : > { %1435 = vmatpush3.msra.mxu1 %v206_v11 }
  0x1c   : > { %1439 = vmatprep.subr.mxu1 %v1677_v8 }
  0xa2   : > { %v233_v2 = vpop.xlane.xlu0 %232 }
  0xa3   : > { %v235_v3 = vmul.f32 0.03125, %v233_v2 }
  0xa5   : > { %v236_v4 = vsub.f32 %v1772_v0, %v235_v3 }
  0xa7   : > { %v237_v5 = vmul.f32 %v236_v4, %v236_v4 }
  0xa9   : > { %v238_v6 = vsel %vm230_vm0, %v237_v5, 0.0 }
  0xaa   : > { %239 = vadd.xlane.f32.xlu0 %v238_v6 }
 0x133   : > { %v240_v12 = vpop.xlane.xlu0 %239 }
 0x134   : > { %v241_v13 = vmul.f32 0.03125, %v240_v12 }
 0x136   : > { %v242_v14 = vadd.f32 1e-05, %v241_v13 }
 0x138   : > { %1591 = vrsqrt.f32 %v242_v14 }
 0x145   : > { %v1592_v15 = vpop.eup %1591 }
 0x146   : > { %v244_v17 = vmul.f32 %v1592_v15, %v236_v4 }
 0x148   : > { %v249_v19 = vmul.f32 %v1352_v16, %v244_v17 }
 0x14a   : > { %v254_v20 = vadd.f32 %v1353_v18, %v249_v19  ;;  %v213_v19 = vld [vmem:[%s2026_s2 + $0x18] sm:$0xff] }
 0x14c   : > { %1437 = vmatmul.mubr.msk.f32.vlgmr.msra.gmra.mxu1 %vm230_vm0, %v254_v20 }
 0x14d   : > { %1441 = vmatprep.mubr.msk.f32.mxu1 %vm1678_vm1, %v1677_v8 }
 0x20c   : > { %v328_v22 = vpop.f32.mrf.mxu1 }
 0x20d   : > { %v1812_v23 = vadd.f32 %v1354_v21, %v328_v22  ;;  %v212_v21 = vld [vmem:[%s2026_s2 + $0x10] sm:$0xff]  ;;  %v211_v22 = vld [vmem:[%s2026_s2 + $0x8] sm:$0xff] }
 0x20e   : > { %v1438_v24 = vpop.f32.mrf.mxu1 }
 0x20f   : > { %334 = vrot.lane.b32.xlu1 %v1812_v23, %s1679_s29  ;;  %v332_v25 = vmul.f32 0.35355338, %v1812_v23  ;;  %v210_v24 = vld [vmem:[%s2026_s2] sm:$0xff] }
 0x211   : > { %499 = vrot.lane.b32.xlu0 %v332_v25, %s1680_s30 }
 0x213   : > { %501 = vrot.lane.b32.xlu1 %v1812_v23, %s1681_s5  ;;  %s1690_s5 = smov 8  }
 0x217   : > { %666 = vrot.lane.b32.xlu1 %v1812_v23, %s1682_s6  ;;  %s1691_s6 = smov 16  }
 0x21b   : > { %831 = vrot.lane.b32.xlu1 %v1812_v23, %s1683_s7  ;;  %s1692_s7 = smov 24  }
 0x21f   : > { %664 = vrot.lane.b32.xlu1 %v332_v25, %s1684_s8 }
 0x223   : > { %829 = vrot.lane.b32.xlu1 %v332_v25, %s1685_s9  ;;  %s1377_s9 = sshll.u32 %s1740_s19, 7  ;;  %s1693_s19 = smov [#allocation2]  }
 0x224   : > { %s1285_s14 = scalar_lea.hbm %s2028_s4, %s1377_s9  ;;  %s1619_s23 = sshll.u32 %s1693_s19, 4  ;;  %s1620_s23 = int_to_ptr.vmem [resolvable:$false] %s1619_s23 }
 0x225   : > { %s1621_s27 = scalar_lea.vmem %s1620_s23, 256 }
 0x281   : > { %v335_v26 = vpop.permute.xlu1 %334 }
 0x282   : > { %1440 = vmatpush3.xpose.msk.msra.mxu1 %vm336_vm2, %v335_v26 }
 0x283   : > { %1444 = vmatprep.subr.mxu1 %v1677_v8  ;;  %v500_v28 = vpop.permute.xlu0 %499 }
 0x285   : > { %v502_v27 = vpop.permute.xlu1 %501  ;;  %1442 = vmatmul.mubr.msk.f32.vlgmr.msra.gmra.mxu1 %vm336_vm2, %v332_v25 }
 0x286   : > { %1450 = vmatpush3.xpose.msk.msra.mxu0 %vm336_vm2, %v502_v27  ;;  %1446 = vmatprep.mubr.msk.f32.mxu1 %vm1678_vm1, %v1677_v8 }
 0x287   : > { %1459 = vmatprep.subr.mxu0 %v1677_v8 }
 0x289   : > { %v667_v29 = vpop.permute.xlu1 %666  ;;  %1452 = vmatmul.mubr.msk.f32.vlgmr.msra.gmra.mxu0 %vm336_vm2, %v500_v28 }
 0x28a   : > { %1460 = vmatpush3.xpose.msk.msra.mxu0 %vm336_vm2, %v667_v29  ;;  %1461 = vmatprep.mubr.msk.f32.mxu0 %vm1678_vm1, %v1677_v8 }
 0x28b   : > { %1469 = vmatprep.subr.mxu0 %v1677_v8 }
 0x28d   : > { %v832_v30 = vpop.permute.xlu1 %831 }
 0x291   : > { %v665_v31 = vpop.permute.xlu1 %664 }
 0x292   : > { %1462 = vmatmul.mubr.msk.f32.vlgmr.msra.gmra.mxu0 %vm336_vm2, %v665_v31 }
 0x293   : > { %1470 = vmatpush3.xpose.msk.msra.mxu0 %vm336_vm2, %v832_v30  ;;  %1471 = vmatprep.mubr.msk.f32.mxu0 %vm1678_vm1, %v1677_v8 }
 0x294   : > { %1501 = vmatprep.subr.mxu0 %v1677_v8 }
 0x295   : > { %v830_v32 = vpop.permute.xlu1 %829 }
 0x296   : > { %1472 = vmatmul.mubr.msk.f32.vlgmr.msra.gmra.mxu0 %vm336_vm2, %v830_v32 }
 0x297   : > { %1533 = vmatprep.mubr.msk.f32.mxu0 %vm1678_vm1, %v1677_v8 }
 0x345   : > { %v408_v33 = vpop.f32.mrf.mxu1 }
 0x346   : > { %v412_v34 = vsel %vm336_vm2, %v408_v33, -inf }
 0x347   : > { %413 = vmax.xlane.f32.xlu1 %v412_v34  ;;  %v1443_v35 = vpop.f32.mrf.mxu1 }
 0x349   : > { %v573_v36 = vpop.f32.mrf.mxu0 }
 0x34a   : > { %v577_v37 = vsel %vm336_vm2, %v573_v36, -inf }
 0x34b   : > { %578 = vmax.xlane.f32.xlu0 %v577_v37  ;;  %v1453_v38 = vpop.f32.mrf.mxu0  ;;  %v1368_v37 = vld [vmem:[%s2027_s3 + $0x2] ss:$0 sm:$0xff] }
 0x352   : > { %v738_v39 = vpop.f32.mrf.mxu0 }
 0x353   : > { %v742_v40 = vsel %vm336_vm2, %v738_v39, -inf }
 0x354   : > { %v1463_v41 = vpop.f32.mrf.mxu0  ;;  %743 = vmax.xlane.f32.xlu1 %v742_v40 }
 0x356   : > { %v903_v42 = vpop.f32.mrf.mxu0 }
 0x357   : > { %v907_v43 = vsel %vm336_vm2, %v903_v42, -inf }
 0x358   : > { %908 = vmax.xlane.f32.xlu0 %v907_v43  ;;  %v1473_v44 = vpop.f32.mrf.mxu0 }
 0x365   : > { %423 = vrot.lane.b32.xlu1 %v1812_v23, %s1686_s10 }
 0x3d0   : > { %v414_v45 = vpop.xlane.xlu1 %413 }
 0x3d1   : > { %v415_v46 = vsub.f32 %v408_v33, %v414_v45 }
 0x3d3   : > { %v416_v47 = vmul.f32 1.442695, %v415_v46 }
 0x3d4   : > { %v579_v48 = vpop.xlane.xlu0 %578 }
 0x3d5   : > { %1593 = vpow2.f32 %v416_v47  ;;  %v580_v49 = vsub.f32 %v573_v36, %v579_v48  ;;  %v205_v48 = vld [vmem:[%s2025_s1 + $0x30] sm:$0xff] }
 0x3d7   : > { %v581_v50 = vmul.f32 1.442695, %v580_v49  ;;  %v203_v49 = vld [vmem:[%s2025_s1 + $0x10] sm:$0xff] }
 0x3d9   : > { %1595 = vpow2.f32 %v581_v50  ;;  %v202_v50 = vld [vmem:[%s2025_s1] sm:$0xff] }
 0x3dd   : > { %v744_v51 = vpop.xlane.xlu1 %743 }
 0x3de   : > { %v745_v52 = vsub.f32 %v738_v39, %v744_v51 }
 0x3e0   : > { %v746_v53 = vmul.f32 1.442695, %v745_v52 }
 0x3e1   : > { %v909_v54 = vpop.xlane.xlu0 %908  ;;  %v424_v55 = vpop.permute.xlu1 %423 }
 0x3e2   : > { %v1594_v56 = vpop.eup %1593  ;;  %1597 = vpow2.f32 %v746_v53  ;;  %v910_v57 = vsub.f32 %v903_v42, %v909_v54  ;;  %1445 = vmatpush3.msra.mxu1 %v424_v55  ;;  %v1370_v55 = vld [vmem:[%s2027_s3 + $0x3] ss:$0 sm:$0xff] }
 0x3e3   : > { %v418_v58 = vsel %vm336_vm2, %v1594_v56, 0.0  ;;  %1454 = vmatprep.subr.mxu1 %v1677_v8 }
 0x3e4   : > { %v911_v59 = vmul.f32 1.442695, %v910_v57  ;;  %419 = vadd.xlane.f32.xlu1 %v418_v58  ;;  %v1371_v57 = vld [vmem:[%s2027_s3 + $0x4] ss:$0 sm:$0xff] }
 0x3e6   : > { %v1596_v60 = vpop.eup %1595  ;;  %1599 = vpow2.f32 %v911_v59 }
 0x3e7   : > { %v583_v61 = vsel %vm336_vm2, %v1596_v60, 0.0 }
 0x3e8   : > { %584 = vadd.xlane.f32.xlu0 %v583_v61  ;;  %v228_v61 = vld [vmem:[%s2026_s2 + $0x90] sm:$0xff] }
 0x3ef   : > { %v1598_v62 = vpop.eup %1597 }
 0x3f0   : > { %v748_v63 = vsel %vm336_vm2, %v1598_v62, 0.0 }
 0x3f1   : > { %749 = vadd.xlane.f32.xlu1 %v748_v63  ;;  %v226_v63 = vld [vmem:[%s2026_s2 + $0x80] sm:$0xff] }
 0x3f3   : > { %v1600_v1 = vpop.eup %1599 }
 0x3f4   : > { %v913_v2 = vsel %vm336_vm2, %v1600_v1, 0.0 }
 0x3f5   : > { %914 = vadd.xlane.f32.xlu0 %v913_v2  ;;  %v224_v2 = vld [vmem:[%s2026_s2 + $0x70] sm:$0xff] }
 0x402   : > { %753 = vrot.lane.b32.xlu1 %v1812_v23, %s1687_s11 }
 0x406   : > { %918 = vrot.lane.b32.xlu1 %v1812_v23, %s1688_s12 }
 0x40b   : > { %588 = vrot.lane.b32.xlu0 %v1812_v23, %s1689_s13 }
 0x46d   : > { %v420_v3 = vpop.xlane.xlu1 %419 }
 0x46e   : > { %1601 = vrcp.f32 %v420_v3  ;;  %v223_v3 = vld [vmem:[%s2026_s2 + $0x68] sm:$0xff] }
 0x471   : > { %v585_v4 = vpop.xlane.xlu0 %584 }
 0x472   : > { %1603 = vrcp.f32 %v585_v4  ;;  %v222_v4 = vld [vmem:[%s2026_s2 + $0x60] sm:$0xff] }
 0x47a   : > { %v750_v5 = vpop.xlane.xlu1 %749 }
 0x47b   : > { %v1602_v6 = vpop.eup %1601  ;;  %1605 = vrcp.f32 %v750_v5  ;;  %v221_v5 = vld [vmem:[%s2026_s2 + $0x58] sm:$0xff] }
 0x47c   : > { %v422_v7 = vmul.f32 %v1602_v6, %v1594_v56  ;;  %v220_v6 = vld [vmem:[%s2026_s2 + $0x50] sm:$0xff] }
 0x47e   : > { %v915_v9 = vpop.xlane.xlu0 %914  ;;  %1447 = vmatmul.mubr.msk.f32.vlgmr.msra.gmra.mxu1 %vm336_vm2, %v422_v7  ;;  %v754_v13 = vpop.permute.xlu1 %753  ;;  %v219_v7 = vld [vmem:[%s2026_s2 + $0x48] sm:$0xff] }
 0x47f   : > { %v1604_v10 = vpop.eup %1603  ;;  %1607 = vrcp.f32 %v915_v9  ;;  %1456 = vmatprep.mubr.msk.f32.mxu1 %vm1678_vm1, %v1677_v8  ;;  %v218_v9 = vld [vmem:[%s2026_s2 + $0x40] sm:$0xff] }
 0x480   : > { %v587_v12 = vmul.f32 %v1604_v10, %v1596_v60  ;;  %v229_v60 = vld [vmem:[%s2026_s2 + $0x98] sm:$0xff] }
 0x481   : > { %1502 = vmatpush3.msra.mxu0 %v229_v60  ;;  %v217_v10 = vld [vmem:[%s2026_s2 + $0x38] sm:$0xff] }
 0x482   : > { %v589_v11 = vpop.permute.xlu0 %588  ;;  %v919_v16 = vpop.permute.xlu1 %918  ;;  %1503 = vmatprep.subr.mxu0 %v1677_v8 }
 0x483   : > { %1455 = vmatpush3.msra.mxu1 %v589_v11  ;;  %1504 = vmatpush3.msra.mxu0 %v228_v61  ;;  %v216_v11 = vld [vmem:[%s2026_s2 + $0x30] sm:$0xff] }
 0x484   : > { %1457 = vmatmul.mubr.msk.f32.vlgmr.msra.gmra.mxu1 %vm336_vm2, %v587_v12  ;;  %1464 = vmatprep.subr.mxu1 %v1677_v8  ;;  %v215_v12 = vld [vmem:[%s2026_s2 + $0x28] sm:$0xff] }
 0x485   : > { %1465 = vmatpush3.msra.mxu1 %v754_v13  ;;  %1466 = vmatprep.mubr.msk.f32.mxu1 %vm1678_vm1, %v1677_v8  ;;  %v214_v13 = vld [vmem:[%s2026_s2 + $0x20] sm:$0xff] }
 0x486   : > { %1474 = vmatprep.subr.mxu1 %v1677_v8  ;;  %1505 = vmatprep.subr.mxu0 %v1677_v8 }
 0x488   : > { %v1606_v14 = vpop.eup %1605 }
 0x489   : > { %v752_v15 = vmul.f32 %v1606_v14, %v1598_v62  ;;  %v227_v62 = vld [vmem:[%s2026_s2 + $0x88] sm:$0xff]  ;;  %v1372_v14 = vld [vmem:[%s2027_s3 + $0x7] ss:$0 sm:$0xff] }
 0x48a   : > { %1506 = vmatpush3.msra.mxu0 %v227_v62 }
 0x48b   : > { %1467 = vmatmul.mubr.msk.f32.vlgmr.msra.gmra.mxu1 %vm336_vm2, %v752_v15  ;;  %1507 = vmatprep.subr.mxu0 %v1677_v8 }
 0x48c   : > { %v1608_v17 = vpop.eup %1607  ;;  %1475 = vmatpush3.msra.mxu1 %v919_v16  ;;  %1476 = vmatprep.mubr.msk.f32.mxu1 %vm1678_vm1, %v1677_v8 }
 0x48d   : > { %v917_v18 = vmul.f32 %v1608_v17, %v1600_v1  ;;  %1479 = vmatprep.subr.mxu1 %v1677_v8  ;;  %1508 = vmatpush3.msra.mxu0 %v226_v63  ;;  %v225_v1 = vld [vmem:[%s2026_s2 + $0x78] sm:$0xff] }
 0x48e   : > { %1509 = vmatprep.subr.mxu0 %v1677_v8 }
 0x48f   : > { %1477 = vmatmul.mubr.msk.f32.vlgmr.msra.gmra.mxu1 %vm336_vm2, %v917_v18  ;;  %1510 = vmatpush3.msra.mxu0 %v225_v1 }
 0x490   : > { %1487 = vmatprep.mubr.msk.f32.mxu1 %vm1678_vm1, %v1677_v8  ;;  %1480 = vmatpush3.msra.mxu1 %v213_v19 }
 0x491   : > { %1481 = vmatprep.subr.mxu1 %v1677_v8  ;;  %1511 = vmatprep.subr.mxu0 %v1677_v8 }
 0x492   : > { %1482 = vmatpush3.msra.mxu1 %v212_v21  ;;  %1512 = vmatpush3.msra.mxu0 %v224_v2 }
 0x493   : > { %1483 = vmatprep.subr.mxu1 %v1677_v8  ;;  %1513 = vmatprep.subr.mxu0 %v1677_v8 }
 0x494   : > { %1484 = vmatpush3.msra.mxu1 %v211_v22  ;;  %1514 = vmatpush3.msra.mxu0 %v223_v3 }
 0x495   : > { %1485 = vmatprep.subr.mxu1 %v1677_v8  ;;  %1515 = vmatprep.subr.mxu0 %v1677_v8 }
 0x496   : > { %1486 = vmatpush3.msra.mxu1 %v210_v24  ;;  %1516 = vmatpush3.msra.mxu0 %v222_v4 }
 0x497   : > { %1490 = vmatprep.subr.mxu1 %v1677_v8  ;;  %1517 = vmatprep.subr.mxu0 %v1677_v8 }
 0x498   : > { %1518 = vmatpush3.msra.mxu0 %v221_v5 }
 0x499   : > { %1519 = vmatprep.subr.mxu0 %v1677_v8 }
 0x49a   : > { %1520 = vmatpush3.msra.mxu0 %v220_v6 }
 0x49b   : > { %1521 = vmatprep.subr.mxu0 %v1677_v8 }
 0x49c   : > { %1522 = vmatpush3.msra.mxu0 %v219_v7 }
 0x49d   : > { %1523 = vmatprep.subr.mxu0 %v1677_v8 }
 0x49e   : > { %1524 = vmatpush3.msra.mxu0 %v218_v9 }
 0x49f   : > { %1525 = vmatprep.subr.mxu0 %v1677_v8 }
 0x4a0   : > { %1526 = vmatpush3.msra.mxu0 %v217_v10 }
 0x4a1   : > { %1527 = vmatprep.subr.mxu0 %v1677_v8 }
 0x4a2   : > { %1528 = vmatpush3.msra.mxu0 %v216_v11 }
 0x4a3   : > { %1529 = vmatprep.subr.mxu0 %v1677_v8 }
 0x4a4   : > { %1530 = vmatpush3.msra.mxu0 %v215_v12 }
 0x4a5   : > { %1531 = vmatprep.subr.mxu0 %v1677_v8 }
 0x4a6   : > { %1532 = vmatpush3.msra.mxu0 %v214_v13 }
 0x53e   : > { %v495_v20 = vpop.f32.mrf.mxu1 }
 0x540   : > { %v1448_v23 = vpop.f32.mrf.mxu1 }
 0x544   : > { %v660_v25 = vpop.f32.mrf.mxu1 }
 0x545   : > { %995 = vrot.lane.b32.xlu0 %v660_v25, %s1690_s5  ;;  %s186_s5 = sand.u32 1, %s1667_s16  }
 0x546   : > { %v1458_v26 = vpop.f32.mrf.mxu1  ;;  %s1274_s20 = scalar_lea.sflag [#allocation3], %s186_s5 }
 0x54b   : > { %v825_v27 = vpop.f32.mrf.mxu1 }
 0x54c   : > { %999 = vrot.lane.b32.xlu1 %v825_v27, %s1691_s6  ;;  %s1350_s6 = sshll.u32 %s186_s5, 3 }
 0x54d   : > { %v1468_v28 = vpop.f32.mrf.mxu1  ;;  %s188_s10 = scalar_lea.vmem [#allocation2], %s1350_s6 }
 0x54e   : > { %s1287_s11 = sshll.u32 %s188_s10, 4  ;;  %s1288_s11 = int_to_ptr.vmem [resolvable:$true] %s1287_s11 }
 0x54f   : > { %v990_v29 = vpop.f32.mrf.mxu1  ;;  %s1615_s22 = scalar_lea.vmem %s1288_s11, 128  ;;  %p1622_p0 = scmp.lt.s32.totalorder %s1288_s11, %s1620_s23 }
 0x550   : > { %1003 = vrot.lane.b32.xlu0 %v990_v29, %s1692_s7  ;;  %p1616_p11 = scmp.ne.s32.totalorder %s1288_s11, %s1615_s22  ;;  %p1623_p1 = scmp.lt.s32.totalorder %s1621_s27, %s1615_s22 }
 0x551   : > { %v1478_v30 = vpop.f32.mrf.mxu1 }
 0x552   : > { %p1617_p12 = pnand %p1616_p11, %p1757_p5  ;;  %p1624_p2 = por %p1623_p1, %p1622_p0 }
 0x554   : > { %p1618_p13 = pneg %p1617_p12 }
 0x556   : > { %p1625_p3 = pnand %p1624_p2, %p1618_p13 }
 0x5b7   : > { %v996_v31 = vpop.permute.xlu0 %995 }
 0x5b8   : > { %v1006_v33 = vsel %vm336_vm2, %v495_v20, %v996_v31 }
 0x5be   : > { %v1000_v32 = vpop.permute.xlu1 %999 }
 0x5bf   : > { %v1008_v34 = vsel %vm1007_vm3, %v1006_v33, %v1000_v32 }
 0x5c2   : > { %v1004_v35 = vpop.permute.xlu0 %1003 }
 0x5c3   : > { %v1010_v36 = vsel %vm1009_vm4, %v1008_v34, %v1004_v35 }
 0x5c4   : > { %1488 = vmatmul.mubr.msk.f32.vlgmr.msra.gmra.mxu1 %vm230_vm0, %v1010_v36 }
 0x5c5   : > { %1498 = vmatprep.mubr.msk.f32.mxu1 %vm1678_vm1, %v1677_v8  ;;  %1491 = vmatpush3.msra.mxu1 %v205_v48 }
 0x5c6   : > { %1492 = vmatprep.subr.mxu1 %v1677_v8 }
 0x684   : > { %v1084_v38 = vpop.f32.mrf.mxu1 }
 0x685   : > { %v1085_v39 = vadd.f32 %v1368_v37, %v1084_v38 }
 0x686   : > { %v1489_v40 = vpop.f32.mrf.mxu1 }
 0x687   : > { %v1891_v41 = vadd.f32 %v1085_v39, %v1772_v0  ;;  %v204_v0 = vld [vmem:[%s2025_s1 + $0x20] sm:$0xff] }
 0x688   : > { %1493 = vmatpush3.msra.mxu1 %v204_v0 }
 0x689   : > { %v1089_v42 = vsel %vm230_vm0, %v1891_v41, 0.0  ;;  %1494 = vmatprep.subr.mxu1 %v1677_v8 }
 0x68a   : > { %1090 = vadd.xlane.f32.xlu1 %v1089_v42  ;;  %1495 = vmatpush3.msra.mxu1 %v203_v49 }
 0x68b   : > { %1496 = vmatprep.subr.mxu1 %v1677_v8  ;;  %v1375_v8 = vld [vmem:[%s2027_s3 + $0x5] ss:$0 sm:$0xff] }
 0x68c   : > { %1497 = vmatpush3.msra.mxu1 %v202_v50 }
 0x713   : > { %v1091_v43 = vpop.xlane.xlu1 %1090 }
 0x714   : > { %v1092_v44 = vmul.f32 0.03125, %v1091_v43 }
 0x716   : > { %v1093_v45 = vsub.f32 %v1891_v41, %v1092_v44 }
 0x718   : > { %v1094_v46 = vmul.f32 %v1093_v45, %v1093_v45 }
 0x71a   : > { %v1095_v47 = vsel %vm230_vm0, %v1094_v46, 0.0 }
 0x71b   : > { %1096 = vadd.xlane.f32.xlu0 %v1095_v47 }
 0x7a4   : > { %v1097_v51 = vpop.xlane.xlu0 %1096 }
 0x7a5   : > { %v1098_v52 = vmul.f32 0.03125, %v1097_v51 }
 0x7a7   : > { %v1099_v53 = vadd.f32 1e-05, %v1098_v52 }
 0x7a9   : > { %1609 = vrsqrt.f32 %v1099_v53 }
 0x7b6   : > { %v1610_v54 = vpop.eup %1609 }
 0x7b7   : > { %v1101_v56 = vmul.f32 %v1610_v54, %v1093_v45 }
 0x7b9   : > { %v1106_v58 = vmul.f32 %v1370_v55, %v1101_v56 }
 0x7bb   : > { %v1111_v59 = vadd.f32 %v1371_v57, %v1106_v58 }
 0x7bd   : > { %1499 = vmatmul.mubr.msk.f32.vlgmr.msra.gmra.mxu1 %vm230_vm0, %v1111_v59 }
 0x87d   : > { %v1185_v15 = vpop.f32.mrf.mxu1 }
 0x87e   : > { %v1186_v16 = vadd.f32 %v1372_v14, %v1185_v15 }
 0x87f   : > { %v1500_v17 = vpop.f32.mrf.mxu1 }
 0x880   : > { %v1374_v18 = vmul.f32 -1.702, %v1186_v16 }
 0x882   : > { %v1191_v19 = vmul.f32 1.442695, %v1374_v18 }
 0x884   : > { %1611 = vpow2.f32 %v1191_v19 }
 0x891   : > { %v1612_v20 = vpop.eup %1611 }
 0x892   : > { %v1193_v21 = vadd.f32 1.0, %v1612_v20 }
 0x894   : > { %1613 = vrcp.f32 %v1193_v21 }
 0x8a1   : > { %v1614_v22 = vpop.eup %1613 }
 0x8a2   : > { %v1196_v23 = vmul.f32 %v1614_v22, %v1186_v16 }
 0x8a4   : > { %1534 = vmatmul.mubr.f32.vlgmr.msra.gmra.mxu0 %v1196_v23 }
 0x964   : > { %v1267_v24 = vpop.f32.mrf.mxu0 }
 0x965   : > { %v1268_v25 = vadd.f32 %v1375_v8, %v1267_v24 }
 0x966   : > { %v1535_v26 = vpop.f32.mrf.mxu0 }
 0x967   : > { %v1271_v27 = vadd.f32 %v1268_v25, %v1891_v41 }
 0x969   : > { %1272 = vst.msk [vmem:[%s188_s10] sm:$0xff] %vm230_vm0, %v1271_v27 }
 0x96a   : > { %1628 = shalt.err (!%p1625_p3)
}
 0x96b   : > { %s1629_s28 = scalar_lea.hbm %s1285_s14, 128  ;;  %s1633_s5 = scalar_lea.hbm %s2028_s4, 256 }
 0x96c   : > { %p1630_p4 = scmp.ne.s32.totalorder %s1285_s14, %s1629_s28  ;;  %p1634_p9 = scmp.lt.s32.totalorder %s1285_s14, %s2028_s4 }
 0x96d   : > { %p1635_p10 = scmp.lt.s32.totalorder %s1633_s5, %s1629_s28 }
 0x96e   : > { %p1631_p7 = pnand %p1630_p4, %p1757_p5 }
 0x96f   : > { %p1636_p11 = por %p1635_p10, %p1634_p9 }
 0x970   : > { %p1632_p8 = pneg %p1631_p7 }
 0x972   : > { %p1637_p12 = pnand %p1636_p11, %p1632_p8 }
 0x974   : > { %1640 = shalt.err (!%p1637_p12)
}
 0x975   : > { %1536 = dma.vmem_to_hbm [thread:$0]  (%p1757_p5), %s1288_s11, 128, %s1285_s14, %s1274_s20  }
 0x976 PF: > { %p1542_p13 = scmp.ge.s32.totalorder %s1675_s18, 2  ;;  %s1299_s8 = sand.u32 1, %s1663_s15  }
 0x977   : > { %s1300_s9 = scalar_lea.sflag [#allocation3], %s1299_s8 }
 0x978   : > { %p1539_p0 = pnand %p1542_p13, %p1761_p6 }
 0x97a   : > { %p1540_p1 = pneg %p1539_p0 }
 0x97c   : > { %1658 = dma.done.wait (%p1540_p1), %s1300_s9, 128  }
 0x97d   : > { %1660 = vsyncadd (%p1540_p1), %s1300_s9, 4294967168  ;;  %p14_p2 = scmp.ge.s32.totalorder %s1744_s21, 4   ;;  %s2031_s15 = smov %s1667_s16 }
 0x97e   : > { %s2032_s16 = smov %s1671_s17  ;;  %s2033_s17 = smov %s1755_s24 }
 0x97f   : > { %s2034_s18 = smov %s1744_s21  ;;  %16 = sbr.rel (!%p14_p2) target bundleno = 3 (0x3), region = 71 }
 0x984   :  { %1305 = vsyncpa [#allocation3], 1 }
 0x985   :  { %1307 = vsyncpa [#allocation3 + $0x1], 1 }

</bundles_post_ra>
